<compile_context>
chip_gen: v7x
topology: tpu7x:2x2x1
jax: 0.10.0
libtpu: 0.0.40
codegen_flags: <defaults>
</compile_context>

<pallas_src>
import functools

import jax
import jax.numpy as jnp
from jax.experimental import pallas as pl
from jax.experimental.pallas import tpu as pltpu


def mlp_kernel(xT_ref, params_ref, o_ref, *, d_in, d_out):
    """One batch tile, all VPU/XLU/EUP work (no MXU).

    xT_ref:     (d_in, B_tile)             x transposed, batch on lanes
    params_ref: (H, d_in + 1 + 2*d_out)    [W1 cols | b1 | W2^T cols | b2 bcast]
    o_ref:      (d_out, B_tile)            lane-dense probabilities
    """
    # ---- layer 1: h[j, b] = relu(b1[j] + sum_k W1[j, k] * x[b, k]) ----------
    h = params_ref[:, d_in:d_in + 1]                              # b1 column (H, 1)
    for k in range(d_in):                                         # tiny, static
        h = h + params_ref[:, k:k + 1] * xT_ref[k:k + 1, :]       # (H,1)*(1,B)->(H,B)
    h = jnp.maximum(h, 0.0)

    # ---- layer 2 + sigmoid: y[o, b] = sum_j W2[o, j] * h[j, b] + b2[o] ------
    rows = []
    for o in range(d_out):                                        # tiny, static
        w2_o = params_ref[:, d_in + 1 + o:d_in + 2 + o]                       # (H, 1)
        b2_o = params_ref[0:1, d_in + 1 + d_out + o:d_in + 2 + d_out + o]     # (1, 1)
        y_o = jnp.sum(h * w2_o, axis=0, keepdims=True) + b2_o                 # (1, B)
        rows.append(y_o)
    y = rows[0] if d_out == 1 else jnp.concatenate(rows, axis=0)              # (d_out, B)
    o_ref[...] = jax.nn.sigmoid(y)


def pack_params(w1, b1, w2, b2):
    """Pack PyTorch-layout params into one (H, d_in + 1 + 2*d_out) f32 slab."""
    hidden, _ = w1.shape
    d_out = w2.shape[0]
    return jnp.concatenate(
        [w1.astype(jnp.float32),                                   # (H, d_in):  W1[:, k]
         b1.astype(jnp.float32)[:, None],                          # (H, 1)
         w2.astype(jnp.float32).T,                                 # (H, d_out): W2[o, :]
         jnp.broadcast_to(b2.astype(jnp.float32)[None, :], (hidden, d_out))],
        axis=1)


def _batch_block(batch):
    # Single grid step for small batches; 128-lane-aligned tiles when the batch
    # scales up (keeps per-step VMEM small and shards the "parallel" grid axis
    # across TensorCores / megacore).
    if batch <= 4096:
        return batch
    for blk in (4096, 2048, 1024, 512, 256, 128):
        if batch % blk == 0:
            return blk
    return batch


def mlp_forward(x, w1, b1, w2, b2):
    """x: (B, d_in); w1: (H, d_in); b1: (H,); w2: (d_out, H); b2: (d_out,).
    Returns sigmoid(relu(x @ w1^T + b1) @ w2^T + b2) with shape (B, d_out)."""
    batch, d_in = x.shape
    hidden, _ = w1.shape
    d_out = w2.shape[0]

    params = pack_params(w1, b1, w2, b2)          # (H, d_in + 1 + 2*d_out)
    xT = x.astype(jnp.float32).T                  # (d_in, B) -- batch on lanes
    n_cols = params.shape[1]

    blk = _batch_block(batch)
    grid = (pl.cdiv(batch, blk),)

    yT = pl.pallas_call(
        functools.partial(mlp_kernel, d_in=d_in, d_out=d_out),
        out_shape=jax.ShapeDtypeStruct((d_out, batch), jnp.float32),
        grid=grid,
        in_specs=[
            pl.BlockSpec((d_in, blk), lambda i: (0, i)),        # batch tile of x^T
            pl.BlockSpec((hidden, n_cols), lambda i: (0, 0)),   # whole param slab
        ],
        out_specs=pl.BlockSpec((d_out, blk), lambda i: (0, i)),
        compiler_params=pltpu.CompilerParams(
            dimension_semantics=("parallel",)),
    )(xT, params)
    return yT.T                                   # back to (B, d_out)


if __name__ == "__main__":
    # XOR-style CBM: input_size=2, hidden=32, single probability output.
    batch, input_size, hidden_dim, output_size = 8, 2, 32, 1

    key = jax.random.PRNGKey(0)
    kx, k1, k2, k3, k4 = jax.random.split(key, 5)

    # PyTorch nn.Linear-style init: weight (out, in), bias (out,), U(+/-1/sqrt(fan_in)).
    lim1 = 1.0 / jnp.sqrt(jnp.float32(input_size))
    lim2 = 1.0 / jnp.sqrt(jnp.float32(hidden_dim))
    w1 = jax.random.uniform(k1, (hidden_dim, input_size), jnp.float32, -lim1, lim1)
    b1 = jax.random.uniform(k2, (hidden_dim,), jnp.float32, -lim1, lim1)
    w2 = jax.random.uniform(k3, (output_size, hidden_dim), jnp.float32, -lim2, lim2)
    b2 = jax.random.uniform(k4, (output_size,), jnp.float32, -lim2, lim2)

    x = jax.random.normal(kx, (batch, input_size), jnp.float32)

    # jit fuses the host-side packing / transposes (pure layout plumbing) with
    # the pallas call so the wrapper adds no extra dispatches.
    fwd = jax.jit(mlp_forward)
    out = jax.block_until_ready(fwd(x, w1, b1, w2, b2))

    # Pure-JAX reference of the same forward semantics (PyTorch layout).
    ref = jax.nn.sigmoid(jnp.maximum(x @ w1.T + b1, 0.0) @ w2.T + b2)
    assert out.shape == (batch, output_size)
    assert jnp.allclose(out, ref, atol=1e-5, rtol=1e-5)

    print("KERNEL_OK")
</pallas_src>

<mosaic_0001>
module attributes {stable_mosaic.version = 11 : i64} {
  func.func @mlp_kernel(%arg0: i32, %arg1: memref<2x8xf32, #tpu.memory_space<vmem>>, %arg2: memref<32x5xf32, #tpu.memory_space<vmem>>, %arg3: memref<1x8xf32, #tpu.memory_space<vmem>>) attributes {dimension_semantics = [#tpu.dimension_semantics<parallel>], iteration_bounds = array<i64: 1>, scalar_prefetch = 0 : i64, scratch_operands = 0 : i64, tpu.core_type = #tpu.core_type<tc>, window_params = [{transform_indices = @transform_0, window_bounds = array<i64: 2, 8>}, {pipeline_mode = #tpu.pipeline_mode<synchronous>, transform_indices = @transform_1, window_bounds = array<i64: 32, 5>}, {transform_indices = @transform_2, window_bounds = array<i64: 1, 8>}]} {
    %c0 = arith.constant 0 : index
    %c2 = arith.constant 2 : index
    %0 = vector.load %arg2[%c0, %c2] : memref<32x5xf32, #tpu.memory_space<vmem>>, vector<32x1xf32>
    %c0_0 = arith.constant 0 : index
    %c0_1 = arith.constant 0 : index
    %1 = vector.load %arg2[%c0_0, %c0_1] : memref<32x5xf32, #tpu.memory_space<vmem>>, vector<32x1xf32>
    %c0_2 = arith.constant 0 : index
    %c0_3 = arith.constant 0 : index
    %2 = vector.load %arg1[%c0_2, %c0_3] : memref<2x8xf32, #tpu.memory_space<vmem>>, vector<1x8xf32>
    %3 = vector.broadcast %1 : vector<32x1xf32> to vector<32x8xf32>
    %4 = vector.broadcast %2 : vector<1x8xf32> to vector<32x8xf32>
    %5 = arith.mulf %3, %4 : vector<32x8xf32>
    %6 = vector.broadcast %0 : vector<32x1xf32> to vector<32x8xf32>
    %7 = arith.addf %6, %5 : vector<32x8xf32>
    %c0_4 = arith.constant 0 : index
    %c1 = arith.constant 1 : index
    %8 = vector.load %arg2[%c0_4, %c1] : memref<32x5xf32, #tpu.memory_space<vmem>>, vector<32x1xf32>
    %c1_5 = arith.constant 1 : index
    %c0_6 = arith.constant 0 : index
    %9 = vector.load %arg1[%c1_5, %c0_6] : memref<2x8xf32, #tpu.memory_space<vmem>>, vector<1x8xf32>
    %10 = vector.broadcast %8 : vector<32x1xf32> to vector<32x8xf32>
    %11 = vector.broadcast %9 : vector<1x8xf32> to vector<32x8xf32>
    %12 = arith.mulf %10, %11 : vector<32x8xf32>
    %13 = arith.addf %7, %12 : vector<32x8xf32>
    %cst = arith.constant 0.000000e+00 : f32
    %14 = vector.broadcast %cst : f32 to vector<32x8xf32>
    %15 = arith.maximumf %13, %14 : vector<32x8xf32>
    %c0_7 = arith.constant 0 : index
    %c3 = arith.constant 3 : index
    %16 = vector.load %arg2[%c0_7, %c3] : memref<32x5xf32, #tpu.memory_space<vmem>>, vector<32x1xf32>
    %c0_8 = arith.constant 0 : index
    %c4 = arith.constant 4 : index
    %17 = vector.load %arg2[%c0_8, %c4] : memref<32x5xf32, #tpu.memory_space<vmem>>, vector<1x1xf32>
    %18 = vector.broadcast %16 : vector<32x1xf32> to vector<32x8xf32>
    %19 = arith.mulf %15, %18 : vector<32x8xf32>
    %cst_9 = arith.constant dense<0.000000e+00> : vector<8xf32>
    %20 = vector.multi_reduction <add>, %19, %cst_9 [0] : vector<32x8xf32> to vector<8xf32>
    %21 = vector.shape_cast %20 : vector<8xf32> to vector<1x8xf32>
    %22 = vector.broadcast %17 : vector<1x1xf32> to vector<1x8xf32>
    %23 = arith.addf %21, %22 : vector<1x8xf32>
    %24 = arith.negf %23 : vector<1x8xf32>
    %25 = math.exp %24 : vector<1x8xf32>
    %cst_10 = arith.constant 1.000000e+00 : f32
    %26 = vector.broadcast %cst_10 : f32 to vector<1x8xf32>
    %27 = arith.addf %26, %25 : vector<1x8xf32>
    %28 = arith.divf %26, %27 : vector<1x8xf32>
    %c0_11 = arith.constant 0 : index
    %c0_12 = arith.constant 0 : index
    %29 = vector.load %arg3[%c0_11, %c0_12] : memref<1x8xf32, #tpu.memory_space<vmem>>, vector<1x8xf32>
    tpu.vector_store %arg3[%c0_11, %c0_12], %28 {strides = array<i32>} : memref<1x8xf32, #tpu.memory_space<vmem>>, vector<1x8xf32>,
    return
  }
  func.func @transform_0(%arg0: i32) -> (i32, i32) {
    %c0_i32 = arith.constant 0 : i32
    %c0_i32_0 = arith.constant 0 : i32
    return %c0_i32, %arg0 : i32, i32
  }
  func.func @transform_1(%arg0: i32) -> (i32, i32) {
    %c0_i32 = arith.constant 0 : i32
    %c0_i32_0 = arith.constant 0 : i32
    %c0_i32_1 = arith.constant 0 : i32
    return %c0_i32, %c0_i32_0 : i32, i32
  }
  func.func @transform_2(%arg0: i32) -> (i32, i32) {
    %c0_i32 = arith.constant 0 : i32
    %c0_i32_0 = arith.constant 0 : i32
    return %c0_i32, %arg0 : i32, i32
  }
}

</mosaic_0001>

<bundles_post_ra>
// kernel: mlp_forward.1
= control target key start
LH: loop header
LB: loop body
LE: loop exit
PB: predicated region body
PF: predicated region fallthrough
CT: control target
= control target key end

     0   :  { %v208_v2 = vmov 0   ;;  %s262_s0 = inlined_call_operand.vmem [shape: f32[2,8], index: 0, kind: input, shape index: {}]   ;;  %s263_s1 = inlined_call_operand.vmem [shape: f32[32,5], index: 1, kind: input, shape index: {}]   ;;  %s264_s2 = inlined_call_operand.hbm [shape: f32[1,8], index: 2, kind: output, shape index: {}]  }
   0x1   :  { %v14_v0 = vld [vmem:[%s263_s1 + $0x10] sm:$0xff]  ;;  %v12_v1 = vld [vmem:[%s263_s1] sm:$0xff]  ;;  %171 = vset.pattern.permute.xlu1 %v208_v2  ;;  %170 = vset.pattern.permute.xlu0 %v208_v2 }
   0x2   :  { %29 = vperm.xlu1 %171, %v14_v0   ;;  %19 = vperm.xlu0 %170, %v12_v1  }
   0x3   :  { %7 = vsyncpa [#allocation3], 0  ;;  %v13_v3 = vld [vmem:[%s263_s1 + $0x8] sm:$0xff]  ;;  %v209_v4 = vmov 2   ;;  %v15_v5 = vld [vmem:[%s263_s1 + $0x18] sm:$0xff]  ;;  %v210_v6 = vmov 1  }
   0x4   :  { %v211_v7 = vmov 3   ;;  %v98_v8 = vld [vmem:[%s263_s1] sm:$0x1]  ;;  %v212_v9 = vmov 4   ;;  %v162_v19 = vld [vmem:[%s262_s0 + $0x1] ss:$0 sm:$0xff] }
   0x5   :  { %v161_v18 = vld [vmem:[%s262_s0] ss:$0 sm:$0xff]  ;;  %vm119_vm0 = vcmask 64512   ;;  %s213_s0 = smov [#allocation2]   ;;  %vm145_vm1 = vcmask 57344  }
   0x6   :  { %172 = vset.pattern.permute.xlu1 %v209_v4  ;;  %24 = vperm.xlu0 %170, %v13_v3   ;;  %s153_s22 = sshll.u32 %s213_s0, 4  ;;  %s154_s22 = int_to_ptr.vmem [resolvable:$true] %s153_s22 }
   0x7   :  { %46 = vperm.xlu1 %172, %v12_v1   ;;  %s184_s23 = scalar_lea.vmem %s154_s22, 16  ;;  %s188_s24 = scalar_lea.vmem %s154_s22, 32 }
   0x8   :  { %p185_p0 = scmp.ne.s32.totalorder %s154_s22, %s184_s23  ;;  %p189_p1 = scmp.lt.s32.totalorder %s154_s22, %s154_s22 }
   0x9   :  { %p190_p2 = scmp.lt.s32.totalorder %s188_s24, %s184_s23 }
   0xa   :  { %34 = vperm.xlu0 %170, %v15_v5  }
   0xb   :  { %173 = vset.pattern.permute.xlu1 %v210_v6  ;;  %p191_p3 = por %p190_p2, %p189_p1 }
   0xc   :  { %67 = vperm.xlu1 %173, %v12_v1  }
   0xd   :  { %p192_p4 = pnand %p191_p3, %p185_p0 }
   0xe   :  { %174 = vset.pattern.permute.xlu0 %v209_v4 }
   0xf   :  { %50 = vperm.xlu0 %174, %v13_v3  }
  0x10   :  { %71 = vperm.xlu1 %173, %v13_v3  }
  0x13   :  { %58 = vperm.xlu0 %174, %v15_v5  }
  0x14   :  { %175 = vset.pattern.permute.xlu1 %v209_v4 }
  0x15   :  { %54 = vperm.xlu1 %175, %v14_v0  }
  0x17   :  { %178 = vset.pattern.permute.xlu0 %v211_v7 }
  0x18   :  { %104 = vperm.xlu0 %178, %v13_v3  }
  0x19   :  { %176 = vset.pattern.permute.xlu1 %v210_v6 }
  0x1a   :  { %75 = vperm.xlu1 %176, %v14_v0  }
  0x1c   :  { %179 = vset.pattern.permute.xlu0 %v212_v9 }
  0x1d   :  { %135 = vperm.xlu0 %179, %v98_v8  }
  0x1e   :  { %79 = vperm.xlu1 %176, %v15_v5  }
  0x22   :  { %177 = vset.pattern.permute.xlu1 %v211_v7 }
  0x23   :  { %100 = vperm.xlu1 %177, %v12_v1  }
  0x27   :  { %108 = vperm.xlu1 %177, %v14_v0  }
  0x2b   :  { %112 = vperm.xlu1 %177, %v15_v5  }
  0x81   :  { %v30_v10 = vpop.permute.xlu1 %29  ;;  %v20_v11 = vpop.permute.xlu0 %19 }
  0x82   :  { %v41_v21 = vmul.f32 %v161_v18, %v20_v11  ;;  %v43_v29 = vmul.f32 %v161_v18, %v30_v10 }
  0x85   :  { %v25_v13 = vpop.permute.xlu0 %24 }
  0x86   :  { %v47_v12 = vpop.permute.xlu1 %46  ;;  %v42_v22 = vmul.f32 %v161_v18, %v25_v13 }
  0x87   :  { %v61_v25 = vadd.f32 %v47_v12, %v41_v21 }
  0x89   :  { %v35_v16 = vpop.permute.xlu0 %34 }
  0x8a   :  { %v44_v33 = vmul.f32 %v161_v18, %v35_v16 }
  0x8b   :  { %v68_v14 = vpop.permute.xlu1 %67 }
  0x8c   :  { %v86_v23 = vmul.f32 %v162_v19, %v68_v14 }
  0x8e   :  { %v51_v20 = vpop.permute.xlu0 %50  ;;  %v90_v30 = vadd.f32 %v86_v23, %v61_v25 }
  0x8f   :  { %v72_v15 = vpop.permute.xlu1 %71  ;;  %v62_v26 = vadd.f32 %v51_v20, %v42_v22 }
  0x90   :  { %v87_v27 = vmul.f32 %v162_v19, %v72_v15  ;;  %v94_v38 = vmax.f32 %v90_v30, 0.0 }
  0x92   :  { %v59_v28 = vpop.permute.xlu0 %58  ;;  %v91_v34 = vadd.f32 %v87_v27, %v62_v26 }
  0x93   :  { %v64_v41 = vadd.f32 %v59_v28, %v44_v33 }
  0x94   :  { %v55_v17 = vpop.permute.xlu1 %54  ;;  %v95_v42 = vmax.f32 %v91_v34, 0.0 }
  0x95   :  { %v63_v35 = vadd.f32 %v55_v17, %v43_v29 }
  0x97   :  { %v105_v39 = vpop.permute.xlu0 %104 }
  0x98   :  { %v116_v44 = vmul.f32 %v105_v39, %v95_v42 }
  0x99   :  { %v76_v24 = vpop.permute.xlu1 %75 }
  0x9a   :  { %v88_v31 = vmul.f32 %v162_v19, %v76_v24  ;;  %v121_v50 = vsel %vm119_vm0, %v116_v44, 0.0 }
  0x9c   :  { %v92_v36 = vadd.f32 %v88_v31, %v63_v35  ;;  %v136_v0 = vpop.permute.xlu0 %135 }
  0x9d   :  { %v80_v32 = vpop.permute.xlu1 %79 }
  0x9e   :  { %v89_v37 = vmul.f32 %v162_v19, %v80_v32  ;;  %v96_v46 = vmax.f32 %v92_v36, 0.0 }
  0xa0   :  { %v93_v45 = vadd.f32 %v89_v37, %v64_v41 }
  0xa2   :  { %v101_v40 = vpop.permute.xlu1 %100  ;;  %v97_v52 = vmax.f32 %v93_v45, 0.0 }
  0xa3   :  { %v115_v43 = vmul.f32 %v101_v40, %v94_v38 }
  0xa5   :  { %v120_v48 = vsel %vm119_vm0, %v115_v43, 0.0 }
  0xa6   :  { %v109_v47 = vpop.permute.xlu1 %108  ;;  %v122_v53 = vadd.f32 %v121_v50, %v120_v48 }
  0xa7   :  { %v117_v49 = vmul.f32 %v109_v47, %v96_v46 }
  0xa9   :  { %v123_v51 = vsel %vm119_vm0, %v117_v49, 0.0 }
  0xaa   :  { %v113_v54 = vpop.permute.xlu1 %112  ;;  %v124_v56 = vadd.f32 %v123_v51, %v122_v53 }
  0xab   :  { %v118_v55 = vmul.f32 %v113_v54, %v97_v52 }
  0xad   :  { %v125_v57 = vsel %vm119_vm0, %v118_v55, 0.0 }
  0xae   :  { %v126_v58 = vadd.f32 %v125_v57, %v124_v56 }
  0xb0   :  { %v127_v59 = vrot.slane %v126_v58, 4 }
  0xb2   :  { %v128_v60 = vadd.f32 %v127_v59, %v126_v58 }
  0xb4   :  { %v129_v61 = vrot.slane %v128_v60, 2 }
  0xb6   :  { %v130_v62 = vadd.f32 %v129_v61, %v128_v60 }
  0xb8   :  { %v131_v63 = vrot.slane %v130_v62, 1 }
  0xba   :  { %v132_v1 = vadd.f32 %v131_v63, %v130_v62 }
  0xbc   :  { %v138_v2 = vadd.f32 %v136_v0, %v132_v1 }
  0xbe   :  { %v163_v3 = vmul.f32 -1.442695, %v138_v2 }
  0xc0   :  { %180 = vpow2.f32 %v163_v3 }
  0xca   :  { %v181_v4 = vpop.eup %180 }
  0xcb   :  { %v142_v5 = vadd.f32 1.0, %v181_v4 }
  0xcd   :  { %182 = vrcp.f32 %v142_v5 }
  0xd7   :  { %v183_v6 = vpop.eup %182 }
  0xd8   :  { %146 = vst.msk [vmem:[#allocation2] sm:$0x1] %vm145_vm1, %v183_v6 }
  0xd9   :  { %195 = shalt.err (!%p192_p4)
}
  0xda   :  { %s196_s27 = scalar_lea.hbm %s264_s2, 16 }
  0xdb   :  { %p197_p5 = scmp.ne.s32.totalorder %s264_s2, %s196_s27  ;;  %p200_p6 = scmp.lt.u32.totalorder %s196_s27, %s264_s2 }
  0xdd   :  { %p202_p7 = pnand %p200_p6, %p197_p5 }
  0xdf   :  { %205 = shalt.err (!%p202_p7)
}
  0xe0   :  { %156 = dma.vmem_to_hbm [thread:$0]  %s154_s22, 16, %s264_s2, [#allocation3]  }
  0xe1   :  { %206 = dma.done.wait [#allocation3], 16  }
  0xe2   :  { %207 = vsyncadd [#allocation3], 4294967280 }
  0xe3   :  { %160 = vsyncpa [#allocation3], 1 }

</bundles_post_ra>
